<compile_context>
chip_gen: v7x
topology: tpu7x:2x2x1
jax: 0.10.0
libtpu: 0.0.40
codegen_flags: <defaults>
</compile_context>

<pallas_src>
import jax
import jax.numpy as jnp
from jax.experimental import pallas as pl
from jax.experimental.pallas import tpu as pltpu

_LAYER_DIMS = [(57, 45), (45, 30), (30, 15), (15, 30), (30, 45), (45, 57)]
_N_LAYERS = len(_LAYER_DIMS)
_PAD = 128            # lane-dense padded feature width used internally
_IN_FEATURES = 57
_OUT_FEATURES = 57


def _round_up(n, m):
    return (n + m - 1) // m * m


def _autoencoder_kernel(x_ref, w_ref, b_ref, out_ref, h_pad):
    """One batch tile: fused 6-layer MLP.

    x_ref  : [tile, 57]  f32   raw input block (no wrapper-side padding)
    w_ref  : [6, 128, 128] bf16 zero-padded weights, pre-transposed to [in, out]
    b_ref  : [6, 1, 128] f32   zero-padded biases
    out_ref: [tile, 57]  f32   valid output lanes only
    h_pad  : [tile, 128] f32   VMEM scratch holding the lane-dense activation
    """
    # Zero the padded lanes (57..127) once; they are never written afterwards,
    # and the scratch persists across grid steps.
    @pl.when(pl.program_id(0) == 0)
    def _():
        h_pad[...] = jnp.zeros_like(h_pad)

    # Feature padding happens here, in VMEM, instead of an extra XLA pass.
    h_pad[:, :_IN_FEATURES] = x_ref[...]
    h = h_pad[...]                                   # [tile, 128] f32

    def layer(h, l, act):
        y = jnp.dot(h.astype(jnp.bfloat16), w_ref[l],
                    preferred_element_type=jnp.float32)
        return act(y + b_ref[l])                     # b_ref[l] is (1,128)

    relu = lambda t: jnp.maximum(t, 0.0)
    # sigmoid(y) == 0.5 * (tanh(0.5*y) + 1): one EUP push instead of exp+recip.
    sigmoid_via_tanh = lambda t: 0.5 * (jnp.tanh(0.5 * t) + 1.0)

    # ---- encoder ----
    h = layer(h, 0, relu)
    h = layer(h, 1, relu)
    h = layer(h, 2, relu)
    # ---- decoder ----
    h = layer(h, 3, jnp.tanh)
    h = layer(h, 4, jnp.tanh)
    h = layer(h, 5, sigmoid_via_tanh)

    # Masked 57-lane store; vst slot is far from saturated, so this is cheap.
    out_ref[...] = h[:, :_OUT_FEATURES]


def pack_params(params):
    """params: list of (W [out,in], b [out]) in PyTorch nn.Linear layout.

    Returns:
      w_blob [6,128,128] bf16 — W.T zero-padded to 128x128 per layer
      b_blob [6,1,128]   f32  — b zero-padded to 128 lanes
    Zero padding guarantees padded lanes contribute nothing downstream.
    """
    assert len(params) == _N_LAYERS
    w_blob = jnp.zeros((_N_LAYERS, _PAD, _PAD), jnp.float32)
    b_blob = jnp.zeros((_N_LAYERS, 1, _PAD), jnp.float32)
    for l, ((fan_in, fan_out), (w, b)) in enumerate(zip(_LAYER_DIMS, params)):
        assert w.shape == (fan_out, fan_in)
        w_blob = w_blob.at[l, :fan_in, :fan_out].set(w.T.astype(jnp.float32))
        b_blob = b_blob.at[l, 0, :fan_out].set(b.astype(jnp.float32))
    return w_blob.astype(jnp.bfloat16), b_blob


def _choose_tile(B, batch_tile):
    """Batch tile: big enough to amortize ~0.35us/step overhead, but always
    >= 2 grid steps once B >= 512 so v7x can shard across both TensorCores."""
    if B >= 512:
        tile = min(batch_tile, _round_up((B + 1) // 2, 8))
    else:
        tile = min(batch_tile, _round_up(max(B, 8), 8))
    return _round_up(tile, 8)


def autoencoder_forward(x, w_blob, b_blob, *, batch_tile=2048):
    """x: [B, 57] float32 -> [B, 57] float32 (matches PyTorch forward)."""
    B, F = x.shape
    assert F == _IN_FEATURES, f"expected {_IN_FEATURES} input features, got {F}"

    if x.dtype != jnp.float32:
        x = x.astype(jnp.float32)

    tile = _choose_tile(B, batch_tile)
    b_pad = _round_up(B, tile)
    if b_pad != B:                       # only pad the batch when actually needed
        x = jnp.pad(x, ((0, b_pad - B), (0, 0)))

    grid = (b_pad // tile,)

    out_p = pl.pallas_call(
        _autoencoder_kernel,
        out_shape=jax.ShapeDtypeStruct((b_pad, _OUT_FEATURES), jnp.float32),
        grid=grid,
        in_specs=[
            pl.BlockSpec((tile, _IN_FEATURES), lambda i: (i, 0)),        # x tile
            pl.BlockSpec((_N_LAYERS, _PAD, _PAD), lambda i: (0, 0, 0)),  # weights
            pl.BlockSpec((_N_LAYERS, 1, _PAD), lambda i: (0, 0, 0)),     # biases
        ],
        out_specs=pl.BlockSpec((tile, _OUT_FEATURES), lambda i: (i, 0)),
        scratch_shapes=[pltpu.VMEM((tile, _PAD), jnp.float32)],
        compiler_params=pltpu.CompilerParams(
            dimension_semantics=("parallel",),
            vmem_limit_bytes=32 * 1024 * 1024,   # usage is only a few MiB
        ),
    )(x, w_blob, b_blob)

    return out_p if b_pad == B else out_p[:B]


def init_params(key):
    """Deterministic init matching PyTorch nn.Linear (weight [out,in], bias [out])."""
    params = []
    for (fan_in, fan_out) in _LAYER_DIMS:
        key, kw, kb = jax.random.split(key, 3)
        bound = 1.0 / (fan_in ** 0.5)
        w = jax.random.uniform(kw, (fan_out, fan_in), jnp.float32, -bound, bound)
        b = jax.random.uniform(kb, (fan_out,), jnp.float32, -bound, bound)
        params.append((w, b))
    return params


def reference_forward(x, params):
    """Plain-JAX f32 reference mirroring the PyTorch forward."""
    acts = [jax.nn.relu, jax.nn.relu, jax.nn.relu,
            jnp.tanh, jnp.tanh, jax.nn.sigmoid]
    h = x
    for (w, b), act in zip(params, acts):
        h = act(h @ w.T + b)
    return h


if __name__ == "__main__":
    key = jax.random.PRNGKey(0)
    key, kx = jax.random.split(key)

    B = 32                                   # small test batch
    x = jax.random.normal(kx, (B, _IN_FEATURES), jnp.float32)

    params = init_params(key)
    w_blob, b_blob = pack_params(params)

    out = autoencoder_forward(x, w_blob, b_blob)
    out = jax.block_until_ready(out)

    ref = reference_forward(x, params)
    assert out.shape == (B, _OUT_FEATURES), out.shape
    # bf16 MXU operands (f32 accumulate) -> loosened tolerance vs f32 reference.
    max_err = float(jnp.max(jnp.abs(out - ref)))
    assert max_err < 2e-2, f"mismatch vs reference: max_err={max_err}"

    print("KERNEL_OK")
</pallas_src>

<mosaic_0001>
module attributes {stable_mosaic.version = 11 : i64} {
  func.func @_autoencoder_kernel(%arg0: i32, %arg1: memref<32x57xf32, #tpu.memory_space<vmem>>, %arg2: memref<6x128x128xbf16, #tpu.memory_space<vmem>>, %arg3: memref<6x1x128xf32, #tpu.memory_space<vmem>>, %arg4: memref<32x57xf32, #tpu.memory_space<vmem>>, %arg5: memref<32x128xf32, #tpu.memory_space<vmem>>) attributes {dimension_semantics = [#tpu.dimension_semantics<parallel>], iteration_bounds = array<i64: 1>, scalar_prefetch = 0 : i64, scratch_operands = 1 : i64, tpu.core_type = #tpu.core_type<tc>, window_params = [{transform_indices = @transform_0, window_bounds = array<i64: 32, 57>}, {pipeline_mode = #tpu.pipeline_mode<synchronous>, transform_indices = @transform_1, window_bounds = array<i64: 6, 128, 128>}, {pipeline_mode = #tpu.pipeline_mode<synchronous>, transform_indices = @transform_2, window_bounds = array<i64: 6, 1, 128>}, {transform_indices = @transform_3, window_bounds = array<i64: 32, 57>}]} {
    %c0_i32 = arith.constant 0 : i32
    %0 = arith.cmpi eq, %arg0, %c0_i32 : i32
    %1 = arith.extui %0 : i1 to i32
    %c0_i32_0 = arith.constant 0 : i32
    %2 = arith.cmpi ne, %1, %c0_i32_0 : i32
    scf.if %2 {
      %cst_50 = arith.constant 0.000000e+00 : f32
      %71 = vector.broadcast %cst_50 : f32 to vector<32x128xf32>
      %c0_51 = arith.constant 0 : index
      %c0_52 = arith.constant 0 : index
      %72 = vector.load %arg5[%c0_51, %c0_52] : memref<32x128xf32, #tpu.memory_space<vmem>>, vector<32x128xf32>
      tpu.vector_store %arg5[%c0_51, %c0_52], %71 {strides = array<i32>} : memref<32x128xf32, #tpu.memory_space<vmem>>, vector<32x128xf32>,
    } else {
    }
    %c0 = arith.constant 0 : index
    %c0_1 = arith.constant 0 : index
    %3 = vector.load %arg1[%c0, %c0_1] : memref<32x57xf32, #tpu.memory_space<vmem>>, vector<32x57xf32>
    %c0_2 = arith.constant 0 : index
    %c0_3 = arith.constant 0 : index
    %4 = vector.load %arg5[%c0_2, %c0_3] : memref<32x128xf32, #tpu.memory_space<vmem>>, vector<32x57xf32>
    tpu.vector_store %arg5[%c0_2, %c0_3], %3 {strides = array<i32>} : memref<32x128xf32, #tpu.memory_space<vmem>>, vector<32x57xf32>,
    %c0_4 = arith.constant 0 : index
    %c0_5 = arith.constant 0 : index
    %5 = vector.load %arg5[%c0_4, %c0_5] : memref<32x128xf32, #tpu.memory_space<vmem>>, vector<32x128xf32>
    %6 = arith.truncf %5 : vector<32x128xf32> to vector<32x128xbf16>
    %c0_6 = arith.constant 0 : index
    %c0_7 = arith.constant 0 : index
    %c0_8 = arith.constant 0 : index
    %7 = vector.load %arg2[%c0_6, %c0_7, %c0_8] : memref<6x128x128xbf16, #tpu.memory_space<vmem>>, vector<1x128x128xbf16>
    %8 = vector.shape_cast %7 : vector<1x128x128xbf16> to vector<128x128xbf16>
    %cst = arith.constant dense<0.000000e+00> : vector<32x128xf32>
    %9 = tpu.matmul %6, %8, %cst {dimension_numbers = #tpu.dot_dimension_numbers<[1], [0], [0], [1], [0, 0, 1, 1], [], []>} : vector<32x128xbf16>, vector<128x128xbf16>, vector<32x128xf32> -> vector<32x128xf32>
    %c0_9 = arith.constant 0 : index
    %c0_10 = arith.constant 0 : index
    %c0_11 = arith.constant 0 : index
    %10 = vector.load %arg3[%c0_9, %c0_10, %c0_11] : memref<6x1x128xf32, #tpu.memory_space<vmem>>, vector<1x1x128xf32>
    %11 = vector.shape_cast %10 : vector<1x1x128xf32> to vector<1x128xf32>
    %12 = vector.broadcast %11 : vector<1x128xf32> to vector<32x128xf32>
    %13 = arith.addf %9, %12 : vector<32x128xf32>
    %cst_12 = arith.constant 0.000000e+00 : f32
    %14 = vector.broadcast %cst_12 : f32 to vector<32x128xf32>
    %15 = arith.maximumf %13, %14 : vector<32x128xf32>
    %16 = arith.truncf %15 : vector<32x128xf32> to vector<32x128xbf16>
    %c1 = arith.constant 1 : index
    %c0_13 = arith.constant 0 : index
    %c0_14 = arith.constant 0 : index
    %17 = vector.load %arg2[%c1, %c0_13, %c0_14] : memref<6x128x128xbf16, #tpu.memory_space<vmem>>, vector<1x128x128xbf16>
    %18 = vector.shape_cast %17 : vector<1x128x128xbf16> to vector<128x128xbf16>
    %cst_15 = arith.constant dense<0.000000e+00> : vector<32x128xf32>
    %19 = tpu.matmul %16, %18, %cst_15 {dimension_numbers = #tpu.dot_dimension_numbers<[1], [0], [0], [1], [0, 0, 1, 1], [], []>} : vector<32x128xbf16>, vector<128x128xbf16>, vector<32x128xf32> -> vector<32x128xf32>
    %c1_16 = arith.constant 1 : index
    %c0_17 = arith.constant 0 : index
    %c0_18 = arith.constant 0 : index
    %20 = vector.load %arg3[%c1_16, %c0_17, %c0_18] : memref<6x1x128xf32, #tpu.memory_space<vmem>>, vector<1x1x128xf32>
    %21 = vector.shape_cast %20 : vector<1x1x128xf32> to vector<1x128xf32>
    %22 = vector.broadcast %21 : vector<1x128xf32> to vector<32x128xf32>
    %23 = arith.addf %19, %22 : vector<32x128xf32>
    %cst_19 = arith.constant 0.000000e+00 : f32
    %24 = vector.broadcast %cst_19 : f32 to vector<32x128xf32>
    %25 = arith.maximumf %23, %24 : vector<32x128xf32>
    %26 = arith.truncf %25 : vector<32x128xf32> to vector<32x128xbf16>
    %c2 = arith.constant 2 : index
    %c0_20 = arith.constant 0 : index
    %c0_21 = arith.constant 0 : index
    %27 = vector.load %arg2[%c2, %c0_20, %c0_21] : memref<6x128x128xbf16, #tpu.memory_space<vmem>>, vector<1x128x128xbf16>
    %28 = vector.shape_cast %27 : vector<1x128x128xbf16> to vector<128x128xbf16>
    %cst_22 = arith.constant dense<0.000000e+00> : vector<32x128xf32>
    %29 = tpu.matmul %26, %28, %cst_22 {dimension_numbers = #tpu.dot_dimension_numbers<[1], [0], [0], [1], [0, 0, 1, 1], [], []>} : vector<32x128xbf16>, vector<128x128xbf16>, vector<32x128xf32> -> vector<32x128xf32>
    %c2_23 = arith.constant 2 : index
    %c0_24 = arith.constant 0 : index
    %c0_25 = arith.constant 0 : index
    %30 = vector.load %arg3[%c2_23, %c0_24, %c0_25] : memref<6x1x128xf32, #tpu.memory_space<vmem>>, vector<1x1x128xf32>
    %31 = vector.shape_cast %30 : vector<1x1x128xf32> to vector<1x128xf32>
    %32 = vector.broadcast %31 : vector<1x128xf32> to vector<32x128xf32>
    %33 = arith.addf %29, %32 : vector<32x128xf32>
    %cst_26 = arith.constant 0.000000e+00 : f32
    %34 = vector.broadcast %cst_26 : f32 to vector<32x128xf32>
    %35 = arith.maximumf %33, %34 : vector<32x128xf32>
    %36 = arith.truncf %35 : vector<32x128xf32> to vector<32x128xbf16>
    %c3 = arith.constant 3 : index
    %c0_27 = arith.constant 0 : index
    %c0_28 = arith.constant 0 : index
    %37 = vector.load %arg2[%c3, %c0_27, %c0_28] : memref<6x128x128xbf16, #tpu.memory_space<vmem>>, vector<1x128x128xbf16>
    %38 = vector.shape_cast %37 : vector<1x128x128xbf16> to vector<128x128xbf16>
    %cst_29 = arith.constant dense<0.000000e+00> : vector<32x128xf32>
    %39 = tpu.matmul %36, %38, %cst_29 {dimension_numbers = #tpu.dot_dimension_numbers<[1], [0], [0], [1], [0, 0, 1, 1], [], []>} : vector<32x128xbf16>, vector<128x128xbf16>, vector<32x128xf32> -> vector<32x128xf32>
    %c3_30 = arith.constant 3 : index
    %c0_31 = arith.constant 0 : index
    %c0_32 = arith.constant 0 : index
    %40 = vector.load %arg3[%c3_30, %c0_31, %c0_32] : memref<6x1x128xf32, #tpu.memory_space<vmem>>, vector<1x1x128xf32>
    %41 = vector.shape_cast %40 : vector<1x1x128xf32> to vector<1x128xf32>
    %42 = vector.broadcast %41 : vector<1x128xf32> to vector<32x128xf32>
    %43 = arith.addf %39, %42 : vector<32x128xf32>
    %44 = math.tanh %43 : vector<32x128xf32>
    %45 = arith.truncf %44 : vector<32x128xf32> to vector<32x128xbf16>
    %c4 = arith.constant 4 : index
    %c0_33 = arith.constant 0 : index
    %c0_34 = arith.constant 0 : index
    %46 = vector.load %arg2[%c4, %c0_33, %c0_34] : memref<6x128x128xbf16, #tpu.memory_space<vmem>>, vector<1x128x128xbf16>
    %47 = vector.shape_cast %46 : vector<1x128x128xbf16> to vector<128x128xbf16>
    %cst_35 = arith.constant dense<0.000000e+00> : vector<32x128xf32>
    %48 = tpu.matmul %45, %47, %cst_35 {dimension_numbers = #tpu.dot_dimension_numbers<[1], [0], [0], [1], [0, 0, 1, 1], [], []>} : vector<32x128xbf16>, vector<128x128xbf16>, vector<32x128xf32> -> vector<32x128xf32>
    %c4_36 = arith.constant 4 : index
    %c0_37 = arith.constant 0 : index
    %c0_38 = arith.constant 0 : index
    %49 = vector.load %arg3[%c4_36, %c0_37, %c0_38] : memref<6x1x128xf32, #tpu.memory_space<vmem>>, vector<1x1x128xf32>
    %50 = vector.shape_cast %49 : vector<1x1x128xf32> to vector<1x128xf32>
    %51 = vector.broadcast %50 : vector<1x128xf32> to vector<32x128xf32>
    %52 = arith.addf %48, %51 : vector<32x128xf32>
    %53 = math.tanh %52 : vector<32x128xf32>
    %54 = arith.truncf %53 : vector<32x128xf32> to vector<32x128xbf16>
    %c5 = arith.constant 5 : index
    %c0_39 = arith.constant 0 : index
    %c0_40 = arith.constant 0 : index
    %55 = vector.load %arg2[%c5, %c0_39, %c0_40] : memref<6x128x128xbf16, #tpu.memory_space<vmem>>, vector<1x128x128xbf16>
    %56 = vector.shape_cast %55 : vector<1x128x128xbf16> to vector<128x128xbf16>
    %cst_41 = arith.constant dense<0.000000e+00> : vector<32x128xf32>
    %57 = tpu.matmul %54, %56, %cst_41 {dimension_numbers = #tpu.dot_dimension_numbers<[1], [0], [0], [1], [0, 0, 1, 1], [], []>} : vector<32x128xbf16>, vector<128x128xbf16>, vector<32x128xf32> -> vector<32x128xf32>
    %c5_42 = arith.constant 5 : index
    %c0_43 = arith.constant 0 : index
    %c0_44 = arith.constant 0 : index
    %58 = vector.load %arg3[%c5_42, %c0_43, %c0_44] : memref<6x1x128xf32, #tpu.memory_space<vmem>>, vector<1x1x128xf32>
    %59 = vector.shape_cast %58 : vector<1x1x128xf32> to vector<1x128xf32>
    %60 = vector.broadcast %59 : vector<1x128xf32> to vector<32x128xf32>
    %61 = arith.addf %57, %60 : vector<32x128xf32>
    %cst_45 = arith.constant 5.000000e-01 : f32
    %62 = vector.broadcast %cst_45 : f32 to vector<32x128xf32>
    %63 = arith.mulf %62, %61 : vector<32x128xf32>
    %64 = math.tanh %63 : vector<32x128xf32>
    %cst_46 = arith.constant 1.000000e+00 : f32
    %65 = vector.broadcast %cst_46 : f32 to vector<32x128xf32>
    %66 = arith.addf %64, %65 : vector<32x128xf32>
    %cst_47 = arith.constant 5.000000e-01 : f32
    %67 = vector.broadcast %cst_47 : f32 to vector<32x128xf32>
    %68 = arith.mulf %67, %66 : vector<32x128xf32>
    %69 = vector.extract_strided_slice %68 {offsets = [0, 0], sizes = [32, 57], strides = [1, 1]} : vector<32x128xf32> to vector<32x57xf32>
    %c0_48 = arith.constant 0 : index
    %c0_49 = arith.constant 0 : index
    %70 = vector.load %arg4[%c0_48, %c0_49] : memref<32x57xf32, #tpu.memory_space<vmem>>, vector<32x57xf32>
    tpu.vector_store %arg4[%c0_48, %c0_49], %69 {strides = array<i32>} : memref<32x57xf32, #tpu.memory_space<vmem>>, vector<32x57xf32>,
    return
  }
  func.func @transform_0(%arg0: i32) -> (i32, i32) {
    %c0_i32 = arith.constant 0 : i32
    %c0_i32_0 = arith.constant 0 : i32
    return %arg0, %c0_i32 : i32, i32
  }
  func.func @transform_1(%arg0: i32) -> (i32, i32, i32) {
    %c0_i32 = arith.constant 0 : i32
    %c0_i32_0 = arith.constant 0 : i32
    %c0_i32_1 = arith.constant 0 : i32
    %c0_i32_2 = arith.constant 0 : i32
    return %c0_i32, %c0_i32_0, %c0_i32_1 : i32, i32, i32
  }
  func.func @transform_2(%arg0: i32) -> (i32, i32, i32) {
    %c0_i32 = arith.constant 0 : i32
    %c0_i32_0 = arith.constant 0 : i32
    %c0_i32_1 = arith.constant 0 : i32
    %c0_i32_2 = arith.constant 0 : i32
    return %c0_i32, %c0_i32_0, %c0_i32_1 : i32, i32, i32
  }
  func.func @transform_3(%arg0: i32) -> (i32, i32) {
    %c0_i32 = arith.constant 0 : i32
    %c0_i32_0 = arith.constant 0 : i32
    return %arg0, %c0_i32 : i32, i32
  }
}

</mosaic_0001>

<bundles_post_ra>
// kernel: tpu_custom_call.1
= control target key start
LH: loop header
LB: loop body
LE: loop exit
PB: predicated region body
PF: predicated region fallthrough
CT: control target
= control target key end

     0   :  { %8 = vsyncpa [#allocation4], 0  ;;  %s1352_s0 = inlined_call_operand.hbm [shape: f32[32,57], index: 0, kind: input, shape index: {}]   ;;  %s1353_s1 = inlined_call_operand.hbm [shape: bf16[6,128,128], index: 1, kind: input, shape index: {}]   ;;  %s1354_s2 = inlined_call_operand.vmem [shape: f32[6,1,128], index: 2, kind: input, shape index: {}]   ;;  %s1355_s3 = inlined_call_operand.hbm [shape: f32[32,57], index: 3, kind: output, shape index: {}]  }
   0x1   :  { %9 = vsyncpa [#allocation7], 0 }
   0x2   :  { %10 = vsyncpa [#allocation5], 0  ;;  %s1256_s12 = smov [#allocation3]   ;;  %s1184_s16 = scalar_lea.hbm %s1352_s0, 512 }
   0x3   :  { %s16_s13 = sshll.u32 %s1256_s12, 4  ;;  %p1185_p0 = scmp.ne.s32.totalorder %s1352_s0, %s1184_s16  ;;  %s17_s13 = int_to_ptr.vmem [resolvable:$true] %s16_s13 }
   0x4   :  { %p1188_p1 = scmp.lt.u32.totalorder %s1184_s16, %s1352_s0 }
   0x6   :  { %p1190_p2 = pnand %p1188_p1, %p1185_p0 }
   0x8   :  { %1193 = shalt.err (!%p1190_p2)
}
   0x9   :  { %s1194_s21 = scalar_lea.vmem %s17_s13, 512  ;;  %p1199_p4 = scmp.lt.s32.totalorder %s17_s13, %s17_s13 }
   0xa   :  { %p1195_p3 = scmp.ne.s32.totalorder %s17_s13, %s1194_s21  ;;  %p1200_p5 = scmp.lt.s32.totalorder %s1194_s21, %s1194_s21 }
   0xc   :  { %p1201_p6 = por %p1200_p5, %p1199_p4 }
   0xe   :  { %p1202_p7 = pnand %p1201_p6, %p1195_p3 }
  0x10   :  { %1205 = shalt.err (!%p1202_p7)
}
  0x11   :  { %s1257_s22 = smov 128   ;;  %s1258_s23 = smov 8  }
  0x12   :  { %22 = dma.hbm_to_vmem [thread:$0]  %s1352_s0, 512, %s17_s13, [#allocation4], %s1257_s22, %s1257_s22, %s1258_s23  }
  0x13   :  { %s1259_s26 = smov [#allocation6]   ;;  %s1206_s30 = scalar_lea.hbm %s1353_s1, 6144 }
  0x14   :  { %s28_s27 = sshll.u32 %s1259_s26, 4  ;;  %p1207_p8 = scmp.ne.s32.totalorder %s1353_s1, %s1206_s30  ;;  %s29_s27 = int_to_ptr.vmem [resolvable:$true] %s28_s27 }
  0x15   :  { %p1210_p9 = scmp.lt.u32.totalorder %s1206_s30, %s1353_s1 }
  0x17   :  { %p1212_p10 = pnand %p1210_p9, %p1207_p8 }
  0x19   :  { %1215 = shalt.err (!%p1212_p10)
}
  0x1a   :  { %s1216_s8 = scalar_lea.vmem %s29_s27, 6144  ;;  %p1221_p12 = scmp.lt.s32.totalorder %s29_s27, %s29_s27 }
  0x1b   :  { %p1217_p11 = scmp.ne.s32.totalorder %s29_s27, %s1216_s8  ;;  %p1222_p13 = scmp.lt.s32.totalorder %s1216_s8, %s1216_s8 }
  0x1d   :  { %p1223_p0 = por %p1222_p13, %p1221_p12 }
  0x1f   :  { %p1224_p1 = pnand %p1223_p0, %p1217_p11 }
  0x21   :  { %1227 = shalt.err (!%p1224_p1)
}
  0x22   :  { %s1260_s0 = smov 64   ;;  %s1261_s9 = smov 4  }
  0x23   :  { %34 = dma.hbm_to_vmem [thread:$0]  %s1353_s1, 6144, %s29_s27, [#allocation7], %s1260_s0, %s1260_s0, %s1261_s9  }
  0x24   :  { %1250 = dma.done.wait [#allocation4], 512  }
  0x25   :  { %1251 = vsyncadd [#allocation4], 4294966784 }
  0x26   :  { %1252 = dma.done.wait [#allocation7], 6144  }
  0x27   :  { %1253 = vsyncadd [#allocation7], 4294961152  ;;  %v1262_v0 = vmov 0.0   ;;  %v1112_v1 = vld [vmem:[#allocation6] sm:$0xff]   ;;  %v1113_v2 = vld [vmem:[#allocation6 + $0x8] sm:$0xff]   ;;  %vm56_vm0 = vcmask 465920  }
  0x28   :  { %48 = vst [vmem:[#allocation2] sm:$0xff] %v1262_v0  ;;  %49 = vst [vmem:[#allocation2 + $0x8] sm:$0xff] %v1262_v0  ;;  %984 = vmatprep.subr.bf16.mxu0 %v1112_v1  ;;  %v1114_v3 = vld [vmem:[#allocation6 + $0x10] sm:$0xff]   ;;  %v1115_v4 = vld [vmem:[#allocation6 + $0x18] sm:$0xff]  }
  0x29   :  { %50 = vst [vmem:[#allocation2 + $0x10] sm:$0xff] %v1262_v0  ;;  %51 = vst [vmem:[#allocation2 + $0x18] sm:$0xff] %v1262_v0  ;;  %985 = vmatpush3.bf16.msra.mxu0 %v1112_v1  ;;  %v52_v5 = vld [vmem:[#allocation3] sm:$0xff]  ;;  %v53_v6 = vld [vmem:[#allocation3 + $0x8] sm:$0xff] }
  0x2a   :  { %986 = vmatprep.subr.bf16.mxu0 %v1113_v2  ;;  %v54_v7 = vld [vmem:[#allocation3 + $0x10] sm:$0xff]  ;;  %57 = vst.msk [vmem:[#allocation2] sm:$0xff] %vm56_vm0, %v52_v5  ;;  %58 = vst.msk [vmem:[#allocation2 + $0x8] sm:$0xff] %vm56_vm0, %v53_v6  ;;  %v55_v8 = vld [vmem:[#allocation3 + $0x18] sm:$0xff] }
  0x2b   :  { %59 = vst.msk [vmem:[#allocation2 + $0x10] sm:$0xff] %vm56_vm0, %v54_v7  ;;  %60 = vst.msk [vmem:[#allocation2 + $0x18] sm:$0xff] %vm56_vm0, %v55_v8  ;;  %v1120_v9 = vld [vmem:[#allocation6 + $0x40] sm:$0xff]   ;;  %v1121_v10 = vld [vmem:[#allocation6 + $0x48] sm:$0xff]  }
  0x2c   :  { %v1116_v11 = vld [vmem:[#allocation6 + $0x20] sm:$0xff]   ;;  %1004 = vmatprep.subr.bf16.mxu1 %v1120_v9  ;;  %v1122_v12 = vld [vmem:[#allocation6 + $0x50] sm:$0xff]   ;;  %v1117_v13 = vld [vmem:[#allocation6 + $0x28] sm:$0xff]  }
  0x2d   :  { %987 = vmatpush3.bf16.msra.mxu0 %v1113_v2  ;;  %1005 = vmatpush3.bf16.msra.mxu1 %v1120_v9  ;;  %v1123_v17 = vld [vmem:[#allocation6 + $0x58] sm:$0xff]   ;;  %v1118_v18 = vld [vmem:[#allocation6 + $0x30] sm:$0xff]   ;;  %v1124_v19 = vld [vmem:[#allocation6 + $0x60] sm:$0xff]  }
  0x2e   :  { %988 = vmatprep.subr.bf16.mxu0 %v1114_v3  ;;  %1006 = vmatprep.subr.bf16.mxu1 %v1121_v10  ;;  %v1119_v20 = vld [vmem:[#allocation6 + $0x38] sm:$0xff]   ;;  %v1125_v21 = vld [vmem:[#allocation6 + $0x68] sm:$0xff]   ;;  %v1126_v25 = vld [vmem:[#allocation6 + $0x70] sm:$0xff]  }
  0x2f   :  { %v1127_v26 = vld [vmem:[#allocation6 + $0x78] sm:$0xff]   ;;  %v1128_v27 = vld [vmem:[#allocation6 + $0x80] sm:$0xff]   ;;  %v1129_v28 = vld [vmem:[#allocation6 + $0x88] sm:$0xff]  }
  0x30   :  { %v1130_v29 = vld [vmem:[#allocation6 + $0x90] sm:$0xff]   ;;  %v1131_v30 = vld [vmem:[#allocation6 + $0x98] sm:$0xff]   ;;  %v1132_v31 = vld [vmem:[#allocation6 + $0xa0] sm:$0xff]  }
  0x31   :  { %989 = vmatpush3.bf16.msra.mxu0 %v1114_v3  ;;  %v61_v14 = vld [vmem:[#allocation2] sm:$0xff]  ;;  %v62_v15 = vld [vmem:[#allocation2 + $0x8] sm:$0xff]  ;;  %1007 = vmatpush3.bf16.msra.mxu1 %v1121_v10  ;;  %v1134_v48 = vld [vmem:[#allocation6 + $0xb0] sm:$0xff]  }
  0x32   :  { %990 = vmatprep.subr.bf16.mxu0 %v1115_v4  ;;  %v65_v16 = vpack.c.bf16 %v62_v15, %v61_v14  ;;  %1008 = vmatprep.subr.bf16.mxu1 %v1122_v12  ;;  %v63_v22 = vld [vmem:[#allocation2 + $0x10] sm:$0xff]  ;;  %v64_v23 = vld [vmem:[#allocation2 + $0x18] sm:$0xff]  ;;  %v1133_v32 = vld [vmem:[#allocation6 + $0xa8] sm:$0xff]  }
  0x33   :  { %v66_v24 = vpack.c.bf16 %v64_v23, %v63_v22  ;;  %v865_v33 = vld [vmem:[%s1354_s2] ss:$0 sm:$0xff]  ;;  %v1135_v49 = vld [vmem:[#allocation6 + $0xb8] sm:$0xff]   ;;  %v1137_v51 = vld [vmem:[#allocation6 + $0xc8] sm:$0xff]  }
  0x34   :  { %1000 = vmatprep.mubr.bf16.mxu0 %v65_v16  ;;  %v1136_v50 = vld [vmem:[#allocation6 + $0xc0] sm:$0xff]   ;;  %v1138_v52 = vld [vmem:[#allocation6 + $0xd0] sm:$0xff]   ;;  %v1139_v53 = vld [vmem:[#allocation6 + $0xd8] sm:$0xff]  }
  0x35   :  { %991 = vmatpush3.bf16.msra.mxu0 %v1115_v4  ;;  %1009 = vmatpush3.bf16.msra.mxu1 %v1122_v12  ;;  %v1140_v54 = vld [vmem:[#allocation6 + $0xe0] sm:$0xff]   ;;  %v1141_v55 = vld [vmem:[#allocation6 + $0xe8] sm:$0xff]   ;;  %v1142_v7 = vld [vmem:[#allocation6 + $0xf0] sm:$0xff]  }
  0x36   :  { %992 = vmatprep.subr.bf16.mxu0 %v1116_v11  ;;  %1010 = vmatprep.subr.bf16.mxu1 %v1123_v17  ;;  %v875_v56 = vld [vmem:[%s1354_s2 + $0x1] ss:$0 sm:$0xff]  ;;  %v1143_v8 = vld [vmem:[#allocation6 + $0xf8] sm:$0xff]   ;;  %v1145_v10 = vld [vmem:[#allocation6 + $0x108] sm:$0xff]  }
  0x37   :  { %v1144_v9 = vld [vmem:[#allocation6 + $0x100] sm:$0xff]  }
  0x38   :  { %v885_v12 = vld [vmem:[%s1354_s2 + $0x2] ss:$0 sm:$0xff] }
  0x39   :  { %993 = vmatpush3.bf16.msra.mxu0 %v1116_v11  ;;  %1011 = vmatpush3.bf16.msra.mxu1 %v1123_v17  ;;  %v1146_v11 = vld [vmem:[#allocation6 + $0x110] sm:$0xff]  }
  0x3a   :  { %994 = vmatprep.subr.bf16.mxu0 %v1117_v13  ;;  %1012 = vmatprep.subr.bf16.mxu1 %v1124_v19 }
  0x3d   :  { %995 = vmatpush3.bf16.msra.mxu0 %v1117_v13  ;;  %1013 = vmatpush3.bf16.msra.mxu1 %v1124_v19 }
  0x3e   :  { %996 = vmatprep.subr.bf16.mxu0 %v1118_v18  ;;  %1014 = vmatprep.subr.bf16.mxu1 %v1125_v21 }
  0x41   :  { %997 = vmatpush3.bf16.msra.mxu0 %v1118_v18  ;;  %1015 = vmatpush3.bf16.msra.mxu1 %v1125_v21 }
  0x42   :  { %998 = vmatprep.subr.bf16.mxu0 %v1119_v20  ;;  %1016 = vmatprep.subr.bf16.mxu1 %v1126_v25 }
  0x45   :  { %999 = vmatpush3.bf16.msra.mxu0 %v1119_v20  ;;  %1017 = vmatpush3.bf16.msra.mxu1 %v1126_v25 }
  0x46   :  { %1018 = vmatprep.subr.bf16.mxu1 %v1127_v26  ;;  %1024 = vmatprep.subr.bf16.mxu0 %v1128_v27 }
  0x48   :  { %1001 = vmatmul.mubr.bf16.vlgmr.msra.gmra.mrb[0].mxu0 %v66_v24 }
  0x49   :  { %1019 = vmatpush3.bf16.msra.mxu1 %v1127_v26  ;;  %1025 = vmatpush3.bf16.msra.mxu0 %v1128_v27  ;;  %v1147_v27 = vld [vmem:[#allocation6 + $0x118] sm:$0xff]  }
  0x4a   :  { %1026 = vmatprep.subr.bf16.mxu0 %v1129_v28  ;;  %1044 = vmatprep.subr.bf16.mxu1 %v1136_v50 }
  0x4d   :  { %1027 = vmatpush3.bf16.msra.mxu0 %v1129_v28  ;;  %v1148_v28 = vld [vmem:[#allocation6 + $0x120] sm:$0xff]  }
  0x4e   :  { %1028 = vmatprep.subr.bf16.mxu0 %v1130_v29 }
  0x51   :  { %1029 = vmatpush3.bf16.msra.mxu0 %v1130_v29  ;;  %v1149_v29 = vld [vmem:[#allocation6 + $0x128] sm:$0xff]  }
  0x52   :  { %1030 = vmatprep.subr.bf16.mxu0 %v1131_v30 }
  0x55   :  { %1031 = vmatpush3.bf16.msra.mxu0 %v1131_v30  ;;  %v1150_v30 = vld [vmem:[#allocation6 + $0x130] sm:$0xff]  }
  0x56   :  { %1032 = vmatprep.subr.bf16.mxu0 %v1132_v31 }
  0x59   :  { %1033 = vmatpush3.bf16.msra.mxu0 %v1132_v31  ;;  %v1151_v31 = vld [vmem:[#allocation6 + $0x138] sm:$0xff]  }
  0x5a   :  { %1034 = vmatprep.subr.bf16.mxu0 %v1133_v32 }
  0x5d   :  { %1035 = vmatpush3.bf16.msra.mxu0 %v1133_v32  ;;  %v1152_v32 = vld [vmem:[#allocation6 + $0x140] sm:$0xff]  }
  0x5e   :  { %1036 = vmatprep.subr.bf16.mxu0 %v1134_v48 }
  0x61   :  { %1037 = vmatpush3.bf16.msra.mxu0 %v1134_v48 }
  0x62   :  { %1038 = vmatprep.subr.bf16.mxu0 %v1135_v49 }
  0x65   :  { %1039 = vmatpush3.bf16.msra.mxu0 %v1135_v49 }
  0x66   :  { %1064 = vmatprep.subr.bf16.mxu0 %v1144_v9 }
 0x11b   :  { %v1002_v34 = vpop.f32.mrb[0].mxu0 }
 0x11c   :  { %v181_v35 = vadd.f32 %v1002_v34, %v865_v33  ;;  %v172_v36 = vpop.f32.mrb[1].mxu0  ;;  %v1154_v34 = vld [vmem:[#allocation6 + $0x150] sm:$0xff]  }
 0x11d   :  { %v173_v37 = vadd.f32 %v865_v33, %v172_v36  ;;  %v1003_v38 = vpop.f32.mrb[2].mxu0 }
 0x11e   :  { %v184_v39 = vadd.f32 %v1003_v38, %v865_v33  ;;  %v175_v40 = vpop.f32.mrb[3].mxu0  ;;  %v189_v42 = vmax.f32 %v181_v35, 0.0  ;;  %v895_v35 = vld [vmem:[%s1354_s2 + $0x3] ss:$0 sm:$0xff] }
 0x11f   :  { %v176_v41 = vadd.f32 %v865_v33, %v175_v40  ;;  %v187_v44 = vmax.f32 %v173_v37, 0.0  ;;  %v1153_v33 = vld [vmem:[#allocation6 + $0x148] sm:$0xff]  }
 0x120   :  { %v190_v43 = vmax.f32 %v184_v39, 0.0 }
 0x121   :  { %v188_v45 = vmax.f32 %v176_v41, 0.0 }
 0x122   :  { %v192_v46 = vpack.c.bf16 %v190_v43, %v189_v42 }
 0x123   :  { %v191_v47 = vpack.c.bf16 %v188_v45, %v187_v44 }
 0x125   :  { %1020 = vmatprep.mubr.bf16.mxu1 %v191_v47 }
 0x126   :  { %1021 = vmatmul.mubr.bf16.vlgmr.msra.gmra.mrb[0].mxu1 %v192_v46 }
 0x127   :  { %1045 = vmatpush3.bf16.msra.mxu1 %v1136_v50  ;;  %v1155_v50 = vld [vmem:[#allocation6 + $0x158] sm:$0xff]  }
 0x128   :  { %1046 = vmatprep.subr.bf16.mxu1 %v1137_v51 }
 0x12b   :  { %1047 = vmatpush3.bf16.msra.mxu1 %v1137_v51  ;;  %v1156_v51 = vld [vmem:[#allocation6 + $0x160] sm:$0xff]  }
 0x12c   :  { %1048 = vmatprep.subr.bf16.mxu1 %v1138_v52 }
 0x12f   :  { %1049 = vmatpush3.bf16.msra.mxu1 %v1138_v52  ;;  %v1157_v52 = vld [vmem:[#allocation6 + $0x168] sm:$0xff]  }
 0x130   :  { %1050 = vmatprep.subr.bf16.mxu1 %v1139_v53 }
 0x133   :  { %1051 = vmatpush3.bf16.msra.mxu1 %v1139_v53  ;;  %v1158_v53 = vld [vmem:[#allocation6 + $0x170] sm:$0xff]  }
 0x134   :  { %1052 = vmatprep.subr.bf16.mxu1 %v1140_v54 }
 0x137   :  { %1053 = vmatpush3.bf16.msra.mxu1 %v1140_v54  ;;  %v1159_v54 = vld [vmem:[#allocation6 + $0x178] sm:$0xff]  }
 0x138   :  { %1054 = vmatprep.subr.bf16.mxu1 %v1141_v55 }
 0x13b   :  { %1055 = vmatpush3.bf16.msra.mxu1 %v1141_v55  ;;  %v905_v55 = vld [vmem:[%s1354_s2 + $0x4] ss:$0 sm:$0xff] }
 0x13c   :  { %1056 = vmatprep.subr.bf16.mxu1 %v1142_v7 }
 0x13f   :  { %1057 = vmatpush3.bf16.msra.mxu1 %v1142_v7 }
 0x140   :  { %1058 = vmatprep.subr.bf16.mxu1 %v1143_v8 }
 0x143   :  { %1059 = vmatpush3.bf16.msra.mxu1 %v1143_v8 }
 0x144   :  { %1084 = vmatprep.subr.bf16.mxu1 %v1152_v32 }
 0x1f9   :  { %v1022_v57 = vpop.f32.mrb[0].mxu1 }
 0x1fa   :  { %v309_v58 = vadd.f32 %v1022_v57, %v875_v56  ;;  %v300_v59 = vpop.f32.mrb[1].mxu1 }
 0x1fb   :  { %v301_v60 = vadd.f32 %v875_v56, %v300_v59  ;;  %v1023_v61 = vpop.f32.mrb[2].mxu1 }
 0x1fc   :  { %v312_v62 = vadd.f32 %v1023_v61, %v875_v56  ;;  %v303_v63 = vpop.f32.mrb[3].mxu1  ;;  %v317_v1 = vmax.f32 %v309_v58, 0.0 }
 0x1fd   :  { %v304_v0 = vadd.f32 %v875_v56, %v303_v63  ;;  %v315_v3 = vmax.f32 %v301_v60, 0.0 }
 0x1fe   :  { %v318_v2 = vmax.f32 %v312_v62, 0.0 }
 0x1ff   :  { %v316_v4 = vmax.f32 %v304_v0, 0.0 }
 0x200   :  { %v320_v5 = vpack.c.bf16 %v318_v2, %v317_v1 }
 0x201   :  { %v319_v6 = vpack.c.bf16 %v316_v4, %v315_v3 }
 0x203   :  { %1040 = vmatprep.mubr.bf16.mxu0 %v319_v6  ;;  %v915_v6 = vld [vmem:[%s1354_s2 + $0x5] ss:$0 sm:$0xff]  ;;  %s1263_s2 = smov [#allocation8]  }
 0x204   :  { %1041 = vmatmul.mubr.bf16.vlgmr.msra.gmra.mrb[4].mxu0 %v320_v5  ;;  %s852_s25 = sshll.u32 %s1263_s2, 4  ;;  %s853_s25 = int_to_ptr.vmem [resolvable:$true] %s852_s25 }
 0x205   :  { %1065 = vmatpush3.bf16.msra.mxu0 %v1144_v9  ;;  %s1228_s26 = scalar_lea.vmem %s853_s25, 512  ;;  %p1233_p3 = scmp.lt.s32.totalorder %s853_s25, %s853_s25 }
 0x206   :  { %1066 = vmatprep.subr.bf16.mxu0 %v1145_v10  ;;  %p1229_p2 = scmp.ne.s32.totalorder %s853_s25, %s1228_s26  ;;  %p1234_p4 = scmp.lt.s32.totalorder %s1228_s26, %s1228_s26 }
 0x208   :  { %p1235_p5 = por %p1234_p4, %p1233_p3 }
 0x209   :  { %1067 = vmatpush3.bf16.msra.mxu0 %v1145_v10 }
 0x20a   :  { %1068 = vmatprep.subr.bf16.mxu0 %v1146_v11  ;;  %p1236_p6 = pnand %p1235_p5, %p1229_p2 }
 0x20d   :  { %1069 = vmatpush3.bf16.msra.mxu0 %v1146_v11 }
 0x20e   :  { %1070 = vmatprep.subr.bf16.mxu0 %v1147_v27 }
 0x211   :  { %1071 = vmatpush3.bf16.msra.mxu0 %v1147_v27 }
 0x212   :  { %1072 = vmatprep.subr.bf16.mxu0 %v1148_v28 }
 0x215   :  { %1073 = vmatpush3.bf16.msra.mxu0 %v1148_v28 }
 0x216   :  { %1074 = vmatprep.subr.bf16.mxu0 %v1149_v29 }
 0x219   :  { %1075 = vmatpush3.bf16.msra.mxu0 %v1149_v29 }
 0x21a   :  { %1076 = vmatprep.subr.bf16.mxu0 %v1150_v30 }
 0x21d   :  { %1077 = vmatpush3.bf16.msra.mxu0 %v1150_v30 }
 0x21e   :  { %1078 = vmatprep.subr.bf16.mxu0 %v1151_v31 }
 0x221   :  { %1079 = vmatpush3.bf16.msra.mxu0 %v1151_v31 }
 0x2d7   :  { %v1042_v13 = vpop.f32.mrb[4].mxu0 }
 0x2d8   :  { %v437_v14 = vadd.f32 %v1042_v13, %v885_v12  ;;  %v428_v15 = vpop.f32.mrb[5].mxu0 }
 0x2d9   :  { %v429_v16 = vadd.f32 %v885_v12, %v428_v15  ;;  %v1043_v17 = vpop.f32.mrb[6].mxu0 }
 0x2da   :  { %v440_v18 = vadd.f32 %v1043_v17, %v885_v12  ;;  %v431_v19 = vpop.f32.mrb[7].mxu0  ;;  %v445_v21 = vmax.f32 %v437_v14, 0.0 }
 0x2db   :  { %v432_v20 = vadd.f32 %v885_v12, %v431_v19  ;;  %v443_v23 = vmax.f32 %v429_v16, 0.0 }
 0x2dc   :  { %v446_v22 = vmax.f32 %v440_v18, 0.0 }
 0x2dd   :  { %v444_v24 = vmax.f32 %v432_v20, 0.0 }
 0x2de   :  { %v448_v25 = vpack.c.bf16 %v446_v22, %v445_v21 }
 0x2df   :  { %v447_v26 = vpack.c.bf16 %v444_v24, %v443_v23 }
 0x2e1   :  { %1060 = vmatprep.mubr.bf16.mxu1 %v447_v26 }
 0x2e2   :  { %1061 = vmatmul.mubr.bf16.vlgmr.msra.gmra.mrb[4].mxu1 %v448_v25 }
 0x2e3   :  { %1085 = vmatpush3.bf16.msra.mxu1 %v1152_v32 }
 0x2e4   :  { %1086 = vmatprep.subr.bf16.mxu1 %v1153_v33 }
 0x2e7   :  { %1087 = vmatpush3.bf16.msra.mxu1 %v1153_v33 }
 0x2e8   :  { %1088 = vmatprep.subr.bf16.mxu1 %v1154_v34 }
 0x2eb   :  { %1089 = vmatpush3.bf16.msra.mxu1 %v1154_v34 }
 0x2ec   :  { %1090 = vmatprep.subr.bf16.mxu1 %v1155_v50 }
 0x2ef   :  { %1091 = vmatpush3.bf16.msra.mxu1 %v1155_v50 }
 0x2f0   :  { %1092 = vmatprep.subr.bf16.mxu1 %v1156_v51 }
 0x2f3   :  { %1093 = vmatpush3.bf16.msra.mxu1 %v1156_v51 }
 0x2f4   :  { %1094 = vmatprep.subr.bf16.mxu1 %v1157_v52 }
 0x2f7   :  { %1095 = vmatpush3.bf16.msra.mxu1 %v1157_v52 }
 0x2f8   :  { %1096 = vmatprep.subr.bf16.mxu1 %v1158_v53 }
 0x2fb   :  { %1097 = vmatpush3.bf16.msra.mxu1 %v1158_v53 }
 0x2fc   :  { %1098 = vmatprep.subr.bf16.mxu1 %v1159_v54 }
 0x2ff   :  { %1099 = vmatpush3.bf16.msra.mxu1 %v1159_v54 }
 0x3b5   :  { %v1062_v36 = vpop.f32.mrb[4].mxu1 }
 0x3b6   :  { %v565_v37 = vadd.f32 %v1062_v36, %v895_v35  ;;  %v556_v38 = vpop.f32.mrb[5].mxu1 }
 0x3b7   :  { %v557_v39 = vadd.f32 %v895_v35, %v556_v38  ;;  %v1063_v40 = vpop.f32.mrb[6].mxu1 }
 0x3b8   :  { %1160 = vtanh.f32 %v565_v37  ;;  %v568_v41 = vadd.f32 %v1063_v40, %v895_v35  ;;  %v559_v42 = vpop.f32.mrb[7].mxu1 }
 0x3b9   :  { %1162 = vtanh.f32 %v557_v39  ;;  %v560_v43 = vadd.f32 %v895_v35, %v559_v42 }
 0x3ba   :  { %1164 = vtanh.f32 %v568_v41 }
 0x3bb   :  { %1166 = vtanh.f32 %v560_v43 }
 0x3c2   :  { %v1161_v44 = vpop.eup %1160 }
 0x3c3   :  { %v1163_v45 = vpop.eup %1162 }
 0x3c4   :  { %v1165_v46 = vpop.eup %1164 }
 0x3c5   :  { %v1167_v47 = vpop.eup %1166  ;;  %v576_v48 = vpack.c.bf16 %v1165_v46, %v1161_v44 }
 0x3c6   :  { %v575_v49 = vpack.c.bf16 %v1167_v47, %v1163_v45 }
 0x3c8   :  { %1080 = vmatprep.mubr.bf16.mxu0 %v575_v49 }
 0x3c9   :  { %1081 = vmatmul.mubr.bf16.vlgmr.msra.gmra.mrb[8].mxu0 %v576_v48 }
 0x49c   :  { %v1082_v56 = vpop.f32.mrb[8].mxu0 }
 0x49d   :  { %v693_v57 = vadd.f32 %v1082_v56, %v905_v55  ;;  %v684_v58 = vpop.f32.mrb[9].mxu0 }
 0x49e   :  { %v685_v59 = vadd.f32 %v905_v55, %v684_v58  ;;  %v1083_v60 = vpop.f32.mrb[10].mxu0 }
 0x49f   :  { %1168 = vtanh.f32 %v693_v57  ;;  %v696_v61 = vadd.f32 %v1083_v60, %v905_v55  ;;  %v687_v62 = vpop.f32.mrb[11].mxu0 }
 0x4a0   :  { %1170 = vtanh.f32 %v685_v59  ;;  %v688_v63 = vadd.f32 %v905_v55, %v687_v62 }
 0x4a1   :  { %1172 = vtanh.f32 %v696_v61 }
 0x4a2   :  { %1174 = vtanh.f32 %v688_v63 }
 0x4a9   :  { %v1169_v0 = vpop.eup %1168 }
 0x4aa   :  { %v1171_v1 = vpop.eup %1170 }
 0x4ab   :  { %v1173_v2 = vpop.eup %1172 }
 0x4ac   :  { %v1175_v3 = vpop.eup %1174  ;;  %v704_v4 = vpack.c.bf16 %v1173_v2, %v1169_v0 }
 0x4ad   :  { %v703_v5 = vpack.c.bf16 %v1175_v3, %v1171_v1 }
 0x4af   :  { %1100 = vmatprep.mubr.bf16.mxu1 %v703_v5 }
 0x4b0   :  { %1101 = vmatmul.mubr.bf16.vlgmr.msra.gmra.mrb[8].mxu1 %v704_v4 }
 0x583   :  { %v1102_v7 = vpop.f32.mrb[8].mxu1 }
 0x584   :  { %v821_v8 = vadd.f32 %v1102_v7, %v915_v6  ;;  %v812_v9 = vpop.f32.mrb[9].mxu1 }
 0x585   :  { %v813_v10 = vadd.f32 %v915_v6, %v812_v9  ;;  %v1103_v11 = vpop.f32.mrb[10].mxu1 }
 0x586   :  { %v829_v12 = vmul.f32 0.5, %v821_v8  ;;  %v824_v13 = vadd.f32 %v1103_v11, %v915_v6  ;;  %v815_v14 = vpop.f32.mrb[11].mxu1 }
 0x587   :  { %v827_v15 = vmul.f32 0.5, %v813_v10  ;;  %v816_v16 = vadd.f32 %v915_v6, %v815_v14 }
 0x588   :  { %1176 = vtanh.f32 %v829_v12  ;;  %v830_v17 = vmul.f32 0.5, %v824_v13 }
 0x589   :  { %1178 = vtanh.f32 %v827_v15  ;;  %v828_v18 = vmul.f32 0.5, %v816_v16 }
 0x58a   :  { %1180 = vtanh.f32 %v830_v17 }
 0x58b   :  { %1182 = vtanh.f32 %v828_v18 }
 0x592   :  { %v1177_v19 = vpop.eup %1176 }
 0x593   :  { %v1179_v20 = vpop.eup %1178  ;;  %v837_v21 = vadd.f32 1.0, %v1177_v19 }
 0x594   :  { %v1181_v22 = vpop.eup %1180  ;;  %v835_v23 = vadd.f32 1.0, %v1179_v20 }
 0x595   :  { %v1183_v24 = vpop.eup %1182  ;;  %v841_v25 = vmul.f32 0.5, %v837_v21  ;;  %v838_v26 = vadd.f32 1.0, %v1181_v22 }
 0x596   :  { %v839_v27 = vmul.f32 0.5, %v835_v23  ;;  %v836_v28 = vadd.f32 1.0, %v1183_v24 }
 0x597   :  { %845 = vst.msk [vmem:[#allocation8 + $0x10] sm:$0xff] %vm56_vm0, %v841_v25  ;;  %v842_v29 = vmul.f32 0.5, %v838_v26 }
 0x598   :  { %843 = vst.msk [vmem:[#allocation8] sm:$0xff] %vm56_vm0, %v839_v27  ;;  %v840_v30 = vmul.f32 0.5, %v836_v28 }
 0x599   :  { %846 = vst.msk [vmem:[#allocation8 + $0x18] sm:$0xff] %vm56_vm0, %v842_v29 }
 0x59a   :  { %844 = vst.msk [vmem:[#allocation8 + $0x8] sm:$0xff] %vm56_vm0, %v840_v30 }
 0x59b   :  { %1239 = shalt.err (!%p1236_p6)
}
 0x59c   :  { %s1240_s29 = scalar_lea.hbm %s1355_s3, 512 }
 0x59d   :  { %p1241_p7 = scmp.ne.s32.totalorder %s1355_s3, %s1240_s29  ;;  %p1244_p8 = scmp.lt.u32.totalorder %s1240_s29, %s1355_s3 }
 0x59f   :  { %p1246_p9 = pnand %p1244_p8, %p1241_p7 }
 0x5a1   :  { %1249 = shalt.err (!%p1246_p9)
}
 0x5a2   :  { %858 = dma.vmem_to_hbm [thread:$0]  %s853_s25, 512, %s1355_s3, [#allocation5], %s1257_s22, %s1257_s22, %s1258_s23  }
 0x5a3   :  { %1254 = dma.done.wait [#allocation5], 512  }
 0x5a4   :  { %1255 = vsyncadd [#allocation5], 4294966784 }
 0x5a5   :  { %862 = vsyncpa [#allocation4], 1 }
 0x5a6   :  { %863 = vsyncpa [#allocation7], 1 }
 0x5a7   :  { %864 = vsyncpa [#allocation5], 1 }

</bundles_post_ra>
